<compile_context>
chip_gen: v5e
topology: v5e:2x2
jax: 0.10.0
libtpu: 0.0.40
codegen_flags: <defaults>
</compile_context>

<pallas_src>
import functools

import jax
import jax.numpy as jnp
from jax.experimental import pallas as pl
from jax.experimental.pallas import tpu as pltpu


LEAKY_SLOPE = 0.01
BN_EPS = 1e-5
LANE = 128
VMEM_LIMIT_BYTES = 32 * 1024 * 1024  # safe across v5e / v6e / v7x


def _round_up(x, m):
    return (x + m - 1) // m * m


def _pick_tile(p, target):
    """Largest multiple of 8 that divides P and is <= target (fallback: P)."""
    t = min(target, p)
    t -= t % 8
    while t >= 8:
        if p % t == 0:
            return t
        t -= 8
    return p


# --------------------------------------------------------------------------
# Kernels
# --------------------------------------------------------------------------
def _conv_stats_kernel(*refs, fuse_input_bn):
    """One P-tile of: [optional BN+LeakyReLU on the patches] -> matmul -> +bias.

    Also emits per-tile BatchNorm partials: sum and sum-of-squares of the
    PRE-bias matmul result.  The bias is folded into the mean analytically in
    the host-side finalize; the variance is bias-invariant.
    """
    if fuse_input_bn:
        x_ref, s_ref, t_ref, w_ref, b_ref, out_ref, stats_ref = refs
    else:
        x_ref, w_ref, b_ref, out_ref, stats_ref = refs

    x = x_ref[...]
    if fuse_input_bn:
        # Previous layer's BatchNorm + LeakyReLU, applied per patch column
        # (per-channel scale/shift tiled over the 9 taps), in f32.
        y = x.astype(jnp.float32) * s_ref[...] + t_ref[...]
        x = jnp.where(y > 0.0, y, LEAKY_SLOPE * y).astype(w_ref.dtype)

    # Single long-K matmul on the MXU, f32 accumulation.
    acc = jnp.dot(x, w_ref[...], preferred_element_type=jnp.float32)

    # Per-tile BN partials (XLU sublane reductions, off the VPU critical path).
    psum = jnp.sum(acc, axis=0, keepdims=True)            # (1, Coutp)
    pssq = jnp.sum(acc * acc, axis=0, keepdims=True)      # (1, Coutp)
    pad = jnp.zeros((6, acc.shape[1]), jnp.float32)
    stats_ref[...] = jnp.concatenate([psum, pssq, pad], axis=0)  # (8, Coutp)

    out_ref[...] = (acc + b_ref[...]).astype(out_ref.dtype)


def _bn_act_kernel(x_ref, scale_ref, shift_ref, out_ref):
    """One P-tile of: x*scale + shift -> LeakyReLU (final-layer BN apply)."""
    y = x_ref[...].astype(jnp.float32) * scale_ref[...] + shift_ref[...]
    out_ref[...] = jnp.where(y > 0.0, y, LEAKY_SLOPE * y).astype(out_ref.dtype)


# --------------------------------------------------------------------------
# pallas_call wrappers
# --------------------------------------------------------------------------
def _conv_bias_stats(patches, w2d, bias, in_scale=None, in_shift=None, *,
                     tile_p, out_dtype):
    """Tiled conv (+ optional fused input BN/LeakyReLU) + bias + BN partials."""
    P, K = patches.shape
    Coutp = w2d.shape[1]
    nt = P // tile_p
    fuse = in_scale is not None

    args = [patches]
    in_specs = [pl.BlockSpec((tile_p, K), lambda i: (i, 0))]
    if fuse:
        args += [in_scale.reshape(1, K), in_shift.reshape(1, K)]
        in_specs += [pl.BlockSpec((1, K), lambda i: (0, 0)),
                     pl.BlockSpec((1, K), lambda i: (0, 0))]
    args += [w2d, bias.reshape(1, Coutp)]
    in_specs += [pl.BlockSpec((K, Coutp), lambda i: (0, 0)),
                 pl.BlockSpec((1, Coutp), lambda i: (0, 0))]

    out, stats = pl.pallas_call(
        functools.partial(_conv_stats_kernel, fuse_input_bn=fuse),
        out_shape=(jax.ShapeDtypeStruct((P, Coutp), out_dtype),
                   jax.ShapeDtypeStruct((nt * 8, Coutp), jnp.float32)),
        grid=(nt,),
        in_specs=in_specs,
        out_specs=(pl.BlockSpec((tile_p, Coutp), lambda i: (i, 0)),
                   pl.BlockSpec((8, Coutp), lambda i: (i, 0))),
        compiler_params=pltpu.CompilerParams(
            dimension_semantics=("parallel",),
            vmem_limit_bytes=VMEM_LIMIT_BYTES),
    )(*args)

    stats = stats.reshape(nt, 8, Coutp)
    return out, jnp.sum(stats[:, 0, :], axis=0), jnp.sum(stats[:, 1, :], axis=0)


def _bn_act_apply(z, scale, shift, *, tile_p):
    P, Coutp = z.shape
    nt = P // tile_p
    return pl.pallas_call(
        _bn_act_kernel,
        out_shape=jax.ShapeDtypeStruct((P, Coutp), jnp.float32),
        grid=(nt,),
        in_specs=[pl.BlockSpec((tile_p, Coutp), lambda i: (i, 0)),
                  pl.BlockSpec((1, Coutp), lambda i: (0, 0)),
                  pl.BlockSpec((1, Coutp), lambda i: (0, 0))],
        out_specs=pl.BlockSpec((tile_p, Coutp), lambda i: (i, 0)),
        compiler_params=pltpu.CompilerParams(
            dimension_semantics=("parallel",),
            vmem_limit_bytes=VMEM_LIMIT_BYTES),
    )(z, scale.reshape(1, Coutp), shift.reshape(1, Coutp))


# --------------------------------------------------------------------------
# Glue (layout only; all hot math happens in the kernels)
# --------------------------------------------------------------------------
def _im2col(x_nhwc, pad_value=None):
    """(N,H,W,C) -> (N*H*W, 9*C); column order is tap-major, channel-minor."""
    N, H, W, C = x_nhwc.shape
    if pad_value is None:
        xp = jnp.pad(x_nhwc, ((0, 0), (1, 1), (1, 1), (0, 0)))
    else:
        # Per-channel pad value (used when the previous layer's BN+LeakyReLU is
        # fused downstream: pad_value maps to exactly 0 after that affine).
        xp = jnp.broadcast_to(pad_value.astype(x_nhwc.dtype).reshape(1, 1, 1, C),
                              (N, H + 2, W + 2, C))
        xp = xp.at[:, 1:H + 1, 1:W + 1, :].set(x_nhwc)
    taps = [xp[:, dy:dy + H, dx:dx + W, :] for dy in range(3) for dx in range(3)]
    return jnp.concatenate(taps, axis=-1).reshape(N * H * W, 9 * C)


def _pack_weight(w_oihw, coutp, dtype):
    """(O,I,3,3) -> (9*I, Coutp); row order matches _im2col column order."""
    O, I, KH, KW = w_oihw.shape
    w = jnp.transpose(w_oihw, (2, 3, 1, 0)).reshape(KH * KW * I, O)
    return jnp.pad(w, ((0, 0), (0, coutp - O))).astype(dtype)


def _pad_vec(v, n, fill=0.0):
    return jnp.pad(v.astype(jnp.float32), (0, n - v.shape[0]),
                   constant_values=fill)


def _bn_scale_shift(ssum, ssq, bias, gamma, beta, count):
    """Finalize BatchNorm (batch stats) from pre-bias sum / sum-of-squares."""
    mean_nobias = ssum / count
    mean = mean_nobias + bias               # bias shifts the mean ...
    var = ssq / count - mean_nobias ** 2    # ... but not the (biased) variance
    scale = gamma * jax.lax.rsqrt(var + BN_EPS)
    shift = beta - mean * scale
    return scale, shift


@functools.partial(jax.jit, static_argnames=("block_rows", "compute_dtype"))
def conv_block_forward(x_nchw, params, block_rows=512,
                       compute_dtype=jnp.float32):
    """Forward pass of `conv_block` (training-mode BatchNorm). NCHW in/out."""
    x = jnp.transpose(x_nchw, (0, 2, 3, 1)).astype(jnp.float32)  # NCHW -> NHWC
    N, H, W, Cin = x.shape
    Cout = params["w1"].shape[0]
    Coutp = _round_up(Cout, LANE)            # lane-dense matmul N-dim / stores
    P = N * H * W
    tile_p = _pick_tile(P, block_rows)

    # -------- layer 1: conv1 + bias (and BN1 partial statistics) -----------
    patches1 = _im2col(x).astype(compute_dtype)                   # (P, 9*Cin)
    w1 = _pack_weight(params["w1"], Coutp, compute_dtype)
    b1 = _pad_vec(params["b1"], Coutp)
    z1, s1, q1 = _conv_bias_stats(patches1, w1, b1,
                                  tile_p=tile_p, out_dtype=compute_dtype)
    scale1, shift1 = _bn_scale_shift(s1, q1, b1,
                                     _pad_vec(params["g1"], Coutp, 1.0),
                                     _pad_vec(params["be1"], Coutp), P)

    # -------- layer 2: BN1 + LeakyReLU fused into conv2's kernel -----------
    # Keep the pre-BN1 activation in compute_dtype (no f32 upcast) so the
    # layer-2 im2col HBM traffic stays at operand precision.
    z1t = z1[:, :Cout].reshape(N, H, W, Cout)                      # pre-BN1
    sc1, sh1 = scale1[:Cout], shift1[:Cout]
    # 'same' padding of the post-BN1/LeakyReLU activation is zero; the
    # equivalent pre-BN1 pad value is -shift/scale per channel.
    # (Assumes gamma1 != 0; a gamma of exactly 0 makes the channel constant.)
    pad1 = jnp.where(sc1 != 0.0, -sh1 / jnp.where(sc1 != 0.0, sc1, 1.0), 0.0)
    patches2 = _im2col(z1t, pad1).astype(compute_dtype)            # (P, 9*Cout)
    s9 = jnp.tile(sc1, 9)       # patch columns are tap-major, channel-minor
    t9 = jnp.tile(sh1, 9)
    w2 = _pack_weight(params["w2"], Coutp, compute_dtype)
    b2 = _pad_vec(params["b2"], Coutp)
    z2, s2, q2 = _conv_bias_stats(patches2, w2, b2, s9, t9,
                                  tile_p=tile_p, out_dtype=compute_dtype)
    scale2, shift2 = _bn_scale_shift(s2, q2, b2,
                                     _pad_vec(params["g2"], Coutp, 1.0),
                                     _pad_vec(params["be2"], Coutp), P)

    # -------- final: BN2 + LeakyReLU apply ----------------------------------
    y = _bn_act_apply(z2, scale2, shift2, tile_p=tile_p)          # (P, Coutp)
    y = y[:, :Cout].reshape(N, H, W, Cout)
    return jnp.transpose(y, (0, 3, 1, 2))                         # NHWC -> NCHW
    # TODO(synk): BatchNorm running_mean/running_var buffer updates (training
    # state mutation) are not modeled; this reproduces forward activations only.


# --------------------------------------------------------------------------
# Pure-JAX reference (for correctness check)
# --------------------------------------------------------------------------
def _ref_layer(x_nhwc, w_oihw, b, gamma, beta):
    y = jax.lax.conv_general_dilated(
        x_nhwc,
        jnp.transpose(w_oihw, (2, 3, 1, 0)),  # HWIO
        window_strides=(1, 1),
        padding="SAME",
        dimension_numbers=("NHWC", "HWIO", "NHWC"),
    )
    y = y + b
    mean = jnp.mean(y, axis=(0, 1, 2), keepdims=True)
    var = jnp.mean((y - mean) ** 2, axis=(0, 1, 2), keepdims=True)
    y = (y - mean) * jax.lax.rsqrt(var + BN_EPS) * gamma + beta
    return jnp.where(y > 0.0, y, LEAKY_SLOPE * y)


def _ref_forward(x_nchw, params):
    x = jnp.transpose(x_nchw, (0, 2, 3, 1))
    y = _ref_layer(x, params["w1"], params["b1"], params["g1"], params["be1"])
    y = _ref_layer(y, params["w2"], params["b2"], params["g2"], params["be2"])
    return jnp.transpose(y, (0, 3, 1, 2))


def init_params(key, in_c, out_c):
    """Deterministic synthetic parameters (shapes match nn.Conv2d/nn.BatchNorm2d)."""
    k1, k2, k3, k4 = jax.random.split(key, 4)
    scale1 = 1.0 / jnp.sqrt(in_c * 9.0)
    scale2 = 1.0 / jnp.sqrt(out_c * 9.0)
    return {
        "w1": jax.random.uniform(k1, (out_c, in_c, 3, 3), jnp.float32, -scale1, scale1),
        "b1": jax.random.uniform(k2, (out_c,), jnp.float32, -scale1, scale1),
        "g1": jnp.ones((out_c,), jnp.float32),   # BatchNorm gamma init
        "be1": jnp.zeros((out_c,), jnp.float32),  # BatchNorm beta init
        "w2": jax.random.uniform(k3, (out_c, out_c, 3, 3), jnp.float32, -scale2, scale2),
        "b2": jax.random.uniform(k4, (out_c,), jnp.float32, -scale2, scale2),
        "g2": jnp.ones((out_c,), jnp.float32),
        "be2": jnp.zeros((out_c,), jnp.float32),
    }


if __name__ == "__main__":
    key = jax.random.PRNGKey(0)
    kx, kp = jax.random.split(key)

    N, C_IN, C_OUT, H, W = 2, 4, 8, 16, 16
    x = jax.random.normal(kx, (N, C_IN, H, W), jnp.float32)
    params = init_params(kp, C_IN, C_OUT)

    ref = jax.block_until_ready(_ref_forward(x, params))

    # f32 path: exact-parity check against the pure-JAX reference.
    # block_rows=128 -> 4 P-tiles, exercises the grid / partial-stats path.
    out = jax.block_until_ready(conv_block_forward(x, params, block_rows=128))
    assert out.shape == (N, C_OUT, H, W), out.shape
    assert jnp.allclose(out, ref, atol=1e-4, rtol=1e-4), \
        float(jnp.max(jnp.abs(out - ref)))

    # bf16-operand path: matmul operands + intermediate activations in bf16,
    # f32 accumulation and BN math.  Tolerance reflects bf16 epsilon x conv
    # fan-in against the f32 reference.
    out_bf16 = jax.block_until_ready(
        conv_block_forward(x, params, block_rows=128,
                           compute_dtype=jnp.bfloat16))
    assert jnp.allclose(out_bf16, ref, atol=5e-2, rtol=5e-2), \
        float(jnp.max(jnp.abs(out_bf16 - ref)))

    print("KERNEL_OK")
</pallas_src>

<mosaic_0001>
module attributes {stable_mosaic.version = 11 : i64} {
  func.func @_conv_stats_kernel(%arg0: i32, %arg1: memref<128x36xf32, #tpu.memory_space<vmem>>, %arg2: memref<36x128xf32, #tpu.memory_space<vmem>>, %arg3: memref<1x128xf32, #tpu.memory_space<vmem>>, %arg4: memref<128x128xf32, #tpu.memory_space<vmem>>, %arg5: memref<8x128xf32, #tpu.memory_space<vmem>>) attributes {dimension_semantics = [#tpu.dimension_semantics<parallel>], iteration_bounds = array<i64: 4>, scalar_prefetch = 0 : i64, scratch_operands = 0 : i64, tpu.core_type = #tpu.core_type<tc>, window_params = [{transform_indices = @transform_0, window_bounds = array<i64: 128, 36>}, {pipeline_mode = #tpu.pipeline_mode<synchronous>, transform_indices = @transform_1, window_bounds = array<i64: 36, 128>}, {pipeline_mode = #tpu.pipeline_mode<synchronous>, transform_indices = @transform_2, window_bounds = array<i64: 1, 128>}, {transform_indices = @transform_3, window_bounds = array<i64: 128, 128>}, {transform_indices = @transform_4, window_bounds = array<i64: 8, 128>}]} {
    %c0 = arith.constant 0 : index
    %c0_0 = arith.constant 0 : index
    %0 = vector.load %arg1[%c0, %c0_0] : memref<128x36xf32, #tpu.memory_space<vmem>>, vector<128x36xf32>
    %c0_1 = arith.constant 0 : index
    %c0_2 = arith.constant 0 : index
    %1 = vector.load %arg2[%c0_1, %c0_2] : memref<36x128xf32, #tpu.memory_space<vmem>>, vector<36x128xf32>
    %cst = arith.constant dense<0.000000e+00> : vector<128x128xf32>
    %2 = tpu.matmul %0, %1, %cst {dimension_numbers = #tpu.dot_dimension_numbers<[1], [0], [0], [1], [0, 0, 1, 1], [], []>} : vector<128x36xf32>, vector<36x128xf32>, vector<128x128xf32> -> vector<128x128xf32>
    %cst_3 = arith.constant dense<0.000000e+00> : vector<128xf32>
    %3 = vector.multi_reduction <add>, %2, %cst_3 [0] : vector<128x128xf32> to vector<128xf32>
    %4 = vector.shape_cast %3 : vector<128xf32> to vector<1x128xf32>
    %5 = arith.mulf %2, %2 : vector<128x128xf32>
    %cst_4 = arith.constant dense<0.000000e+00> : vector<128xf32>
    %6 = vector.multi_reduction <add>, %5, %cst_4 [0] : vector<128x128xf32> to vector<128xf32>
    %7 = vector.shape_cast %6 : vector<128xf32> to vector<1x128xf32>
    %cst_5 = arith.constant 0.000000e+00 : f32
    %8 = vector.broadcast %cst_5 : f32 to vector<6x128xf32>
    %9 = tpu.concatenate %4, %7, %8 in 0 : vector<1x128xf32>, vector<1x128xf32>, vector<6x128xf32> -> vector<8x128xf32>
    %c0_6 = arith.constant 0 : index
    %c0_7 = arith.constant 0 : index
    %10 = vector.load %arg5[%c0_6, %c0_7] : memref<8x128xf32, #tpu.memory_space<vmem>>, vector<8x128xf32>
    tpu.vector_store %arg5[%c0_6, %c0_7], %9 {strides = array<i32>} : memref<8x128xf32, #tpu.memory_space<vmem>>, vector<8x128xf32>,
    %c0_8 = arith.constant 0 : index
    %c0_9 = arith.constant 0 : index
    %11 = vector.load %arg3[%c0_8, %c0_9] : memref<1x128xf32, #tpu.memory_space<vmem>>, vector<1x128xf32>
    %12 = vector.broadcast %11 : vector<1x128xf32> to vector<128x128xf32>
    %13 = arith.addf %2, %12 : vector<128x128xf32>
    %c0_10 = arith.constant 0 : index
    %c0_11 = arith.constant 0 : index
    %14 = vector.load %arg4[%c0_10, %c0_11] : memref<128x128xf32, #tpu.memory_space<vmem>>, vector<128x128xf32>
    tpu.vector_store %arg4[%c0_10, %c0_11], %13 {strides = array<i32>} : memref<128x128xf32, #tpu.memory_space<vmem>>, vector<128x128xf32>,
    return
  }
  func.func @transform_0(%arg0: i32) -> (i32, i32) {
    %c0_i32 = arith.constant 0 : i32
    %c0_i32_0 = arith.constant 0 : i32
    return %arg0, %c0_i32 : i32, i32
  }
  func.func @transform_1(%arg0: i32) -> (i32, i32) {
    %c0_i32 = arith.constant 0 : i32
    %c0_i32_0 = arith.constant 0 : i32
    %c0_i32_1 = arith.constant 0 : i32
    return %c0_i32, %c0_i32_0 : i32, i32
  }
  func.func @transform_2(%arg0: i32) -> (i32, i32) {
    %c0_i32 = arith.constant 0 : i32
    %c0_i32_0 = arith.constant 0 : i32
    %c0_i32_1 = arith.constant 0 : i32
    return %c0_i32, %c0_i32_0 : i32, i32
  }
  func.func @transform_3(%arg0: i32) -> (i32, i32) {
    %c0_i32 = arith.constant 0 : i32
    %c0_i32_0 = arith.constant 0 : i32
    return %arg0, %c0_i32 : i32, i32
  }
  func.func @transform_4(%arg0: i32) -> (i32, i32) {
    %c0_i32 = arith.constant 0 : i32
    %c0_i32_0 = arith.constant 0 : i32
    return %arg0, %c0_i32 : i32, i32
  }
}

module attributes {stable_mosaic.version = 11 : i64} {
  func.func @_conv_stats_kernel(%arg0: i32, %arg1: memref<128x72xf32, #tpu.memory_space<vmem>>, %arg2: memref<1x72xf32, #tpu.memory_space<vmem>>, %arg3: memref<1x72xf32, #tpu.memory_space<vmem>>, %arg4: memref<72x128xf32, #tpu.memory_space<vmem>>, %arg5: memref<1x128xf32, #tpu.memory_space<vmem>>, %arg6: memref<128x128xf32, #tpu.memory_space<vmem>>, %arg7: memref<8x128xf32, #tpu.memory_space<vmem>>) attributes {dimension_semantics = [#tpu.dimension_semantics<parallel>], iteration_bounds = array<i64: 4>, scalar_prefetch = 0 : i64, scratch_operands = 0 : i64, tpu.core_type = #tpu.core_type<tc>, window_params = [{transform_indices = @transform_0, window_bounds = array<i64: 128, 72>}, {pipeline_mode = #tpu.pipeline_mode<synchronous>, transform_indices = @transform_1, window_bounds = array<i64: 1, 72>}, {pipeline_mode = #tpu.pipeline_mode<synchronous>, transform_indices = @transform_2, window_bounds = array<i64: 1, 72>}, {pipeline_mode = #tpu.pipeline_mode<synchronous>, transform_indices = @transform_3, window_bounds = array<i64: 72, 128>}, {pipeline_mode = #tpu.pipeline_mode<synchronous>, transform_indices = @transform_4, window_bounds = array<i64: 1, 128>}, {transform_indices = @transform_5, window_bounds = array<i64: 128, 128>}, {transform_indices = @transform_6, window_bounds = array<i64: 8, 128>}]} {
    %c0 = arith.constant 0 : index
    %c0_0 = arith.constant 0 : index
    %0 = vector.load %arg1[%c0, %c0_0] : memref<128x72xf32, #tpu.memory_space<vmem>>, vector<128x72xf32>
    %c0_1 = arith.constant 0 : index
    %c0_2 = arith.constant 0 : index
    %1 = vector.load %arg2[%c0_1, %c0_2] : memref<1x72xf32, #tpu.memory_space<vmem>>, vector<1x72xf32>
    %2 = vector.broadcast %1 : vector<1x72xf32> to vector<128x72xf32>
    %3 = arith.mulf %0, %2 : vector<128x72xf32>
    %c0_3 = arith.constant 0 : index
    %c0_4 = arith.constant 0 : index
    %4 = vector.load %arg3[%c0_3, %c0_4] : memref<1x72xf32, #tpu.memory_space<vmem>>, vector<1x72xf32>
    %5 = vector.broadcast %4 : vector<1x72xf32> to vector<128x72xf32>
    %6 = arith.addf %3, %5 : vector<128x72xf32>
    %cst = arith.constant 0.000000e+00 : f32
    %7 = vector.broadcast %cst : f32 to vector<128x72xf32>
    %8 = arith.cmpf ogt, %6, %7 : vector<128x72xf32>
    %cst_5 = arith.constant 0.00999999977 : f32
    %9 = vector.broadcast %cst_5 : f32 to vector<128x72xf32>
    %10 = arith.mulf %9, %6 : vector<128x72xf32>
    %11 = arith.select %8, %6, %10 : vector<128x72xi1>, vector<128x72xf32>
    %c0_6 = arith.constant 0 : index
    %c0_7 = arith.constant 0 : index
    %12 = vector.load %arg4[%c0_6, %c0_7] : memref<72x128xf32, #tpu.memory_space<vmem>>, vector<72x128xf32>
    %cst_8 = arith.constant dense<0.000000e+00> : vector<128x128xf32>
    %13 = tpu.matmul %11, %12, %cst_8 {dimension_numbers = #tpu.dot_dimension_numbers<[1], [0], [0], [1], [0, 0, 1, 1], [], []>} : vector<128x72xf32>, vector<72x128xf32>, vector<128x128xf32> -> vector<128x128xf32>
    %cst_9 = arith.constant dense<0.000000e+00> : vector<128xf32>
    %14 = vector.multi_reduction <add>, %13, %cst_9 [0] : vector<128x128xf32> to vector<128xf32>
    %15 = vector.shape_cast %14 : vector<128xf32> to vector<1x128xf32>
    %16 = arith.mulf %13, %13 : vector<128x128xf32>
    %cst_10 = arith.constant dense<0.000000e+00> : vector<128xf32>
    %17 = vector.multi_reduction <add>, %16, %cst_10 [0] : vector<128x128xf32> to vector<128xf32>
    %18 = vector.shape_cast %17 : vector<128xf32> to vector<1x128xf32>
    %cst_11 = arith.constant 0.000000e+00 : f32
    %19 = vector.broadcast %cst_11 : f32 to vector<6x128xf32>
    %20 = tpu.concatenate %15, %18, %19 in 0 : vector<1x128xf32>, vector<1x128xf32>, vector<6x128xf32> -> vector<8x128xf32>
    %c0_12 = arith.constant 0 : index
    %c0_13 = arith.constant 0 : index
    %21 = vector.load %arg7[%c0_12, %c0_13] : memref<8x128xf32, #tpu.memory_space<vmem>>, vector<8x128xf32>
    tpu.vector_store %arg7[%c0_12, %c0_13], %20 {strides = array<i32>} : memref<8x128xf32, #tpu.memory_space<vmem>>, vector<8x128xf32>,
    %c0_14 = arith.constant 0 : index
    %c0_15 = arith.constant 0 : index
    %22 = vector.load %arg5[%c0_14, %c0_15] : memref<1x128xf32, #tpu.memory_space<vmem>>, vector<1x128xf32>
    %23 = vector.broadcast %22 : vector<1x128xf32> to vector<128x128xf32>
    %24 = arith.addf %13, %23 : vector<128x128xf32>
    %c0_16 = arith.constant 0 : index
    %c0_17 = arith.constant 0 : index
    %25 = vector.load %arg6[%c0_16, %c0_17] : memref<128x128xf32, #tpu.memory_space<vmem>>, vector<128x128xf32>
    tpu.vector_store %arg6[%c0_16, %c0_17], %24 {strides = array<i32>} : memref<128x128xf32, #tpu.memory_space<vmem>>, vector<128x128xf32>,
    return
  }
  func.func @transform_0(%arg0: i32) -> (i32, i32) {
    %c0_i32 = arith.constant 0 : i32
    %c0_i32_0 = arith.constant 0 : i32
    return %arg0, %c0_i32 : i32, i32
  }
  func.func @transform_1(%arg0: i32) -> (i32, i32) {
    %c0_i32 = arith.constant 0 : i32
    %c0_i32_0 = arith.constant 0 : i32
    %c0_i32_1 = arith.constant 0 : i32
    return %c0_i32, %c0_i32_0 : i32, i32
  }
  func.func @transform_2(%arg0: i32) -> (i32, i32) {
    %c0_i32 = arith.constant 0 : i32
    %c0_i32_0 = arith.constant 0 : i32
    %c0_i32_1 = arith.constant 0 : i32
    return %c0_i32, %c0_i32_0 : i32, i32
  }
  func.func @transform_3(%arg0: i32) -> (i32, i32) {
    %c0_i32 = arith.constant 0 : i32
    %c0_i32_0 = arith.constant 0 : i32
    %c0_i32_1 = arith.constant 0 : i32
    return %c0_i32, %c0_i32_0 : i32, i32
  }
  func.func @transform_4(%arg0: i32) -> (i32, i32) {
    %c0_i32 = arith.constant 0 : i32
    %c0_i32_0 = arith.constant 0 : i32
    %c0_i32_1 = arith.constant 0 : i32
    return %c0_i32, %c0_i32_0 : i32, i32
  }
  func.func @transform_5(%arg0: i32) -> (i32, i32) {
    %c0_i32 = arith.constant 0 : i32
    %c0_i32_0 = arith.constant 0 : i32
    return %arg0, %c0_i32 : i32, i32
  }
  func.func @transform_6(%arg0: i32) -> (i32, i32) {
    %c0_i32 = arith.constant 0 : i32
    %c0_i32_0 = arith.constant 0 : i32
    return %arg0, %c0_i32 : i32, i32
  }
}

module attributes {stable_mosaic.version = 11 : i64} {
  func.func @_bn_act_kernel(%arg0: i32, %arg1: memref<128x128xf32, #tpu.memory_space<vmem>>, %arg2: memref<1x128xf32, #tpu.memory_space<vmem>>, %arg3: memref<1x128xf32, #tpu.memory_space<vmem>>, %arg4: memref<128x128xf32, #tpu.memory_space<vmem>>) attributes {dimension_semantics = [#tpu.dimension_semantics<parallel>], iteration_bounds = array<i64: 4>, scalar_prefetch = 0 : i64, scratch_operands = 0 : i64, tpu.core_type = #tpu.core_type<tc>, window_params = [{transform_indices = @transform_0, window_bounds = array<i64: 128, 128>}, {pipeline_mode = #tpu.pipeline_mode<synchronous>, transform_indices = @transform_1, window_bounds = array<i64: 1, 128>}, {pipeline_mode = #tpu.pipeline_mode<synchronous>, transform_indices = @transform_2, window_bounds = array<i64: 1, 128>}, {transform_indices = @transform_3, window_bounds = array<i64: 128, 128>}]} {
    %c0 = arith.constant 0 : index
    %c0_0 = arith.constant 0 : index
    %0 = vector.load %arg1[%c0, %c0_0] : memref<128x128xf32, #tpu.memory_space<vmem>>, vector<128x128xf32>
    %c0_1 = arith.constant 0 : index
    %c0_2 = arith.constant 0 : index
    %1 = vector.load %arg2[%c0_1, %c0_2] : memref<1x128xf32, #tpu.memory_space<vmem>>, vector<1x128xf32>
    %2 = vector.broadcast %1 : vector<1x128xf32> to vector<128x128xf32>
    %3 = arith.mulf %0, %2 : vector<128x128xf32>
    %c0_3 = arith.constant 0 : index
    %c0_4 = arith.constant 0 : index
    %4 = vector.load %arg3[%c0_3, %c0_4] : memref<1x128xf32, #tpu.memory_space<vmem>>, vector<1x128xf32>
    %5 = vector.broadcast %4 : vector<1x128xf32> to vector<128x128xf32>
    %6 = arith.addf %3, %5 : vector<128x128xf32>
    %cst = arith.constant 0.000000e+00 : f32
    %7 = vector.broadcast %cst : f32 to vector<128x128xf32>
    %8 = arith.cmpf ogt, %6, %7 : vector<128x128xf32>
    %cst_5 = arith.constant 0.00999999977 : f32
    %9 = vector.broadcast %cst_5 : f32 to vector<128x128xf32>
    %10 = arith.mulf %9, %6 : vector<128x128xf32>
    %11 = arith.select %8, %6, %10 : vector<128x128xi1>, vector<128x128xf32>
    %c0_6 = arith.constant 0 : index
    %c0_7 = arith.constant 0 : index
    %12 = vector.load %arg4[%c0_6, %c0_7] : memref<128x128xf32, #tpu.memory_space<vmem>>, vector<128x128xf32>
    tpu.vector_store %arg4[%c0_6, %c0_7], %11 {strides = array<i32>} : memref<128x128xf32, #tpu.memory_space<vmem>>, vector<128x128xf32>,
    return
  }
  func.func @transform_0(%arg0: i32) -> (i32, i32) {
    %c0_i32 = arith.constant 0 : i32
    %c0_i32_0 = arith.constant 0 : i32
    return %arg0, %c0_i32 : i32, i32
  }
  func.func @transform_1(%arg0: i32) -> (i32, i32) {
    %c0_i32 = arith.constant 0 : i32
    %c0_i32_0 = arith.constant 0 : i32
    %c0_i32_1 = arith.constant 0 : i32
    return %c0_i32, %c0_i32_0 : i32, i32
  }
  func.func @transform_2(%arg0: i32) -> (i32, i32) {
    %c0_i32 = arith.constant 0 : i32
    %c0_i32_0 = arith.constant 0 : i32
    %c0_i32_1 = arith.constant 0 : i32
    return %c0_i32, %c0_i32_0 : i32, i32
  }
  func.func @transform_3(%arg0: i32) -> (i32, i32) {
    %c0_i32 = arith.constant 0 : i32
    %c0_i32_0 = arith.constant 0 : i32
    return %arg0, %c0_i32 : i32, i32
  }
}

</mosaic_0001>

<bundles_post_ra>
// kernel: conv_block_forward.3
= control target key start
LH: loop header
LB: loop body
LE: loop exit
PB: predicated region body
PF: predicated region fallthrough
CT: control target
= control target key end

     0   :  { %s623_s15 = smov 0   ;;  %s755_s0 = inlined_call_operand.vmem [shape: f32[512,36], index: 0, kind: input, shape index: {}]   ;;  %s756_s1 = inlined_call_operand.vmem [shape: f32[36,128], index: 1, kind: input, shape index: {}]   ;;  %s757_s2 = inlined_call_operand.vmem [shape: f32[1,128], index: 2, kind: input, shape index: {}]   ;;  %s758_s3 = inlined_call_operand.vmem [shape: f32[512,128], index: 3, kind: output, shape index: {0}]   ;;  %s759_s4 = inlined_call_operand.vmem [shape: f32[32,128], index: 4, kind: output, shape index: {1}]  }
   0x1 LB: > { %s629_s16 = sadd.s32 4294967295, %s596_s15   ;;  %p541_p0 = scmp.ge.s32.totalorder %s596_s15, 1  ;;  %s596_s15 = sphi %s623_s15, %s15_s15  }
   0x2   : > { %p166_p1 = scmp.lt.s32.totalorder %s596_s15, 5 }
   0x4   : > { %p167_p2 = pnand %p541_p0, %p166_p1 }
   0x5   : > { %s542_s21 = sshll.u32 (!%p167_p2), %s629_s16, 4  ;;  %p208_p4 = scmp.lt.s32.totalorder (!%p167_p2), %s629_s16, 3 }
   0x6   : > { %170 = sbr.rel (%p167_p2) target bundleno = 214 (0xd6), region = 32  ;;  %p197_p3 = scmp.lt.s32.totalorder (!%p167_p2), %s542_s21, 63 }
   0xb   : > { %v232_v0 = vld [vmem:[%s756_s1 + $0x20] sm:$0xf]  ;;  %vm282_vm0 = vcmask 1043456   ;;  %v231_v1 = vld [vmem:[%s756_s1 + $0x18] sm:$0xff]  ;;  %v230_v2 = vld [vmem:[%s756_s1 + $0x10] sm:$0xff]  ;;  %s761_s21 = smov (!%p197_p3, %s542_s21), 63 }
   0xc   : > { %547 = vmatpush.msk.msra.mxu0 %vm282_vm0, %v232_v0  ;;  %566 = vmatpush.msk.msra.mxu1 %vm282_vm0, %v232_v0  ;;  %v229_v3 = vld [vmem:[%s756_s1 + $0x8] sm:$0xff]  ;;  %s543_s26 = sshll.u32 %s761_s21, 3  ;;  %v228_v4 = vld [vmem:[%s756_s1] sm:$0xff]  ;;  %vm233_vm1 = vcmask 293888   ;;  %s763_s16 = smov (!%p208_p4, %s629_s16), 3  ;;  %vm409_vm2 = vcmask 1040384  }
   0xd   : > { %567 = vmatpush.msk.msra.mxu2 %vm282_vm0, %v232_v0  ;;  %568 = vmatpush.msk.msra.mxu3 %vm282_vm0, %v232_v0  ;;  %s657_s5 = scalar_lea.vmem %s755_s0, %s543_s26  ;;  %v694_v21 = vld [vmem:[%s757_s2] ss:$0 sm:$0xff]  ;;  %s701_s10 = scalar_lea.vmem %s758_s3, %s543_s26  ;;  %vm411_vm3 = vcmask 1041408  }
   0xe   : > { %298 = vmatpush.msra.mxu0 %v231_v1  ;;  %569 = vmatpush.msra.mxu1 %v231_v1  ;;  %v212_v5 = vld [vmem:[%s657_s5] sm:$0xff]  ;;  %v213_v9 = vld [vmem:[%s657_s5 + $0x8] sm:$0xff]  ;;  %v214_v13 = vld [vmem:[%s657_s5 + $0x10] sm:$0xff]  ;;  %s546_s11 = sshll.u32 %s763_s16, 3 }
   0xf   : > { %570 = vmatpush.msra.mxu2 %v231_v1  ;;  %571 = vmatpush.msra.mxu3 %v231_v1  ;;  %v216_v6 = vld [vmem:[%s657_s5 + $0x20] sm:$0xff]  ;;  %v217_v10 = vld [vmem:[%s657_s5 + $0x28] sm:$0xff]  ;;  %v218_v14 = vld [vmem:[%s657_s5 + $0x30] sm:$0xff]  ;;  %s211_s14 = scalar_lea.vmem %s759_s4, %s546_s11 }
  0x10   : > { %299 = vmatpush.msra.mxu0 %v230_v2  ;;  %572 = vmatpush.msra.mxu1 %v230_v2  ;;  %v220_v7 = vld [vmem:[%s657_s5 + $0x40] sm:$0xff]  ;;  %v221_v11 = vld [vmem:[%s657_s5 + $0x48] sm:$0xff]  ;;  %v222_v15 = vld [vmem:[%s657_s5 + $0x50] sm:$0xff] }
  0x11   : > { %573 = vmatpush.msra.mxu2 %v230_v2  ;;  %574 = vmatpush.msra.mxu3 %v230_v2  ;;  %v224_v8 = vld [vmem:[%s657_s5 + $0x60] sm:$0xff]  ;;  %v225_v12 = vld [vmem:[%s657_s5 + $0x68] sm:$0xff]  ;;  %v226_v16 = vld [vmem:[%s657_s5 + $0x70] sm:$0xff] }
  0x12   : > { %300 = vmatpush.msra.mxu0 %v229_v3  ;;  %575 = vmatpush.msra.mxu1 %v229_v3  ;;  %v215_v17 = vld [vmem:[%s657_s5 + $0x18] sm:$0xff] }
  0x13   : > { %576 = vmatpush.msra.mxu2 %v229_v3  ;;  %577 = vmatpush.msra.mxu3 %v229_v3  ;;  %v219_v18 = vld [vmem:[%s657_s5 + $0x38] sm:$0xff] }
  0x14   : > { %301 = vmatpush.msra.mxu0 %v228_v4  ;;  %578 = vmatpush.msra.mxu1 %v228_v4  ;;  %v223_v19 = vld [vmem:[%s657_s5 + $0x58] sm:$0xff] }
  0x15   : > { %548 = vmatmul.msk.f32.vlgmr.msra.gmra.mxu0 %vm233_vm1, %v212_v5  ;;  %552 = vmatmul.msk.f32.vlgmr.msra.gmra.mxu1 %vm233_vm1, %v216_v6  ;;  %v227_v20 = vld [vmem:[%s657_s5 + $0x78] sm:$0xff] }
  0x16   : > { %579 = vmatpush.msra.mxu2 %v228_v4  ;;  %580 = vmatpush.msra.mxu3 %v228_v4 }
  0x17   : > { %556 = vmatmul.msk.f32.vlgmr.msra.gmra.mxu2 %vm233_vm1, %v220_v7  ;;  %560 = vmatmul.msk.f32.vlgmr.msra.gmra.mxu3 %vm233_vm1, %v224_v8 }
  0x1d   : > { %549 = vmatmul.msk.f32.gmra.mxu0 %vm233_vm1, %v213_v9  ;;  %553 = vmatmul.msk.f32.gmra.mxu1 %vm233_vm1, %v217_v10 }
  0x1f   : > { %557 = vmatmul.msk.f32.gmra.mxu2 %vm233_vm1, %v221_v11  ;;  %561 = vmatmul.msk.f32.gmra.mxu3 %vm233_vm1, %v225_v12 }
  0x25   : > { %550 = vmatmul.msk.f32.gmra.mxu0 %vm233_vm1, %v214_v13  ;;  %554 = vmatmul.msk.f32.gmra.mxu1 %vm233_vm1, %v218_v14 }
  0x27   : > { %558 = vmatmul.msk.f32.gmra.mxu2 %vm233_vm1, %v222_v15  ;;  %562 = vmatmul.msk.f32.gmra.mxu3 %vm233_vm1, %v226_v16 }
  0x2d   : > { %551 = vmatmul.msk.f32.gmra.mxu0 %vm233_vm1, %v215_v17  ;;  %555 = vmatmul.msk.f32.gmra.mxu1 %vm233_vm1, %v219_v18 }
  0x2f   : > { %559 = vmatmul.msk.f32.gmra.mxu2 %vm233_vm1, %v223_v19  ;;  %563 = vmatmul.msk.f32.gmra.mxu3 %vm233_vm1, %v227_v20 }
  0x92   : > { %v303_v22 = vpop.f32.mrf.mxu0  ;;  %v315_v23 = vpop.f32.mrf.mxu1 }
  0x93   : > { %v418_v24 = vadd.f32 %v694_v21, %v303_v22  ;;  %v422_v25 = vadd.f32 %v694_v21, %v315_v23  ;;  %v372_v43 = vmul.f32 %v303_v22, %v303_v22  ;;  %v376_v58 = vmul.f32 %v315_v23, %v315_v23 }
  0x95   : > { %434 = vst [vmem:[%s701_s10] sm:$0xff] %v418_v24 }
  0x96   : > { %438 = vst [vmem:[%s701_s10 + $0x20] sm:$0xff] %v422_v25 }
  0x9a   : > { %v306_v26 = vpop.f32.mrf.mxu0  ;;  %v318_v27 = vpop.f32.mrf.mxu1 }
  0x9b   : > { %v419_v28 = vadd.f32 %v694_v21, %v306_v26  ;;  %v327_v29 = vpop.f32.mrf.mxu2  ;;  %v708_v30 = vpop.f32.mrf.mxu3  ;;  %v423_v31 = vadd.f32 %v694_v21, %v318_v27  ;;  %v373_v41 = vmul.f32 %v306_v26, %v306_v26  ;;  %v351_v44 = vadd.f32 %v306_v26, %v303_v22 }
  0x9c   : > { %v426_v32 = vadd.f32 %v694_v21, %v327_v29  ;;  %v430_v33 = vadd.f32 %v694_v21, %v708_v30  ;;  %v377_v62 = vmul.f32 %v318_v27, %v318_v27  ;;  %v380_v11 = vmul.f32 %v327_v29, %v327_v29 }
  0x9d   : > { %435 = vst [vmem:[%s701_s10 + $0x8] sm:$0xff] %v419_v28  ;;  %v388_v46 = vadd.f32 %v373_v41, %v372_v43  ;;  %v384_v24 = vmul.f32 %v708_v30, %v708_v30 }
  0x9e   : > { %439 = vst [vmem:[%s701_s10 + $0x28] sm:$0xff] %v423_v31 }
  0x9f   : > { %442 = vst [vmem:[%s701_s10 + $0x40] sm:$0xff] %v426_v32 }
  0xa0   : > { %446 = vst [vmem:[%s701_s10 + $0x60] sm:$0xff] %v430_v33 }
  0xa2   : > { %v309_v34 = vpop.f32.mrf.mxu0  ;;  %v321_v35 = vpop.f32.mrf.mxu1 }
  0xa3   : > { %v420_v36 = vadd.f32 %v694_v21, %v309_v34  ;;  %v330_v37 = vpop.f32.mrf.mxu2  ;;  %v719_v38 = vpop.f32.mrf.mxu3  ;;  %v424_v39 = vadd.f32 %v694_v21, %v321_v35  ;;  %v374_v45 = vmul.f32 %v309_v34, %v309_v34  ;;  %v352_v47 = vadd.f32 %v351_v44, %v309_v34 }
  0xa4   : > { %v427_v40 = vadd.f32 %v694_v21, %v330_v37  ;;  %v431_v42 = vadd.f32 %v694_v21, %v719_v38  ;;  %v378_v2 = vmul.f32 %v321_v35, %v321_v35  ;;  %v381_v14 = vmul.f32 %v330_v37, %v330_v37 }
  0xa5   : > { %436 = vst [vmem:[%s701_s10 + $0x10] sm:$0xff] %v420_v36  ;;  %v389_v50 = vadd.f32 %v388_v46, %v374_v45  ;;  %v385_v26 = vmul.f32 %v719_v38, %v719_v38 }
  0xa6   : > { %440 = vst [vmem:[%s701_s10 + $0x30] sm:$0xff] %v424_v39 }
  0xa7   : > { %443 = vst [vmem:[%s701_s10 + $0x48] sm:$0xff] %v427_v40 }
  0xa8   : > { %447 = vst [vmem:[%s701_s10 + $0x68] sm:$0xff] %v431_v42 }
  0xaa   : > { %v312_v48 = vpop.f32.mrf.mxu0  ;;  %v324_v49 = vpop.f32.mrf.mxu1 }
  0xab   : > { %v353_v51 = vadd.f32 %v352_v47, %v312_v48  ;;  %v375_v52 = vmul.f32 %v312_v48, %v312_v48  ;;  %v421_v53 = vadd.f32 %v694_v21, %v312_v48  ;;  %v333_v54 = vpop.f32.mrf.mxu2  ;;  %v345_v55 = vpop.f32.mrf.mxu3  ;;  %v425_v56 = vadd.f32 %v694_v21, %v324_v49 }
  0xac   : > { %v428_v57 = vadd.f32 %v694_v21, %v333_v54  ;;  %v432_v61 = vadd.f32 %v694_v21, %v345_v55  ;;  %v379_v4 = vmul.f32 %v324_v49, %v324_v49  ;;  %v382_v18 = vmul.f32 %v333_v54, %v333_v54 }
  0xad   : > { %v354_v59 = vadd.f32 %v353_v51, %v315_v23  ;;  %v390_v60 = vadd.f32 %v389_v50, %v375_v52  ;;  %437 = vst [vmem:[%s701_s10 + $0x18] sm:$0xff] %v421_v53  ;;  %v386_v31 = vmul.f32 %v345_v55, %v345_v55 }
  0xae   : > { %441 = vst [vmem:[%s701_s10 + $0x38] sm:$0xff] %v425_v56 }
  0xaf   : > { %v391_v63 = vadd.f32 %v390_v60, %v376_v58  ;;  %v355_v0 = vadd.f32 %v354_v59, %v318_v27  ;;  %444 = vst [vmem:[%s701_s10 + $0x50] sm:$0xff] %v428_v57 }
  0xb0   : > { %448 = vst [vmem:[%s701_s10 + $0x70] sm:$0xff] %v432_v61 }
  0xb1   : > { %v356_v1 = vadd.f32 %v355_v0, %v321_v35  ;;  %v392_v3 = vadd.f32 %v391_v63, %v377_v62 }
  0xb3   : > { %v393_v5 = vadd.f32 %v392_v3, %v378_v2  ;;  %v357_v6 = vadd.f32 %v356_v1, %v324_v49  ;;  %v336_v7 = vpop.f32.mrf.mxu2  ;;  %v348_v8 = vpop.f32.mrf.mxu3 }
  0xb4   : > { %v429_v9 = vadd.f32 %v694_v21, %v336_v7  ;;  %v433_v10 = vadd.f32 %v694_v21, %v348_v8  ;;  %v383_v20 = vmul.f32 %v336_v7, %v336_v7  ;;  %v387_v33 = vmul.f32 %v348_v8, %v348_v8 }
  0xb5   : > { %v358_v12 = vadd.f32 %v357_v6, %v327_v29  ;;  %v394_v13 = vadd.f32 %v393_v5, %v379_v4 }
  0xb6   : > { %445 = vst [vmem:[%s701_s10 + $0x58] sm:$0xff] %v429_v9 }
  0xb7   : > { %v395_v15 = vadd.f32 %v394_v13, %v380_v11  ;;  %v359_v16 = vadd.f32 %v358_v12, %v330_v37  ;;  %449 = vst [vmem:[%s701_s10 + $0x78] sm:$0xff] %v433_v10 }
  0xb9   : > { %v360_v17 = vadd.f32 %v359_v16, %v333_v54  ;;  %v396_v19 = vadd.f32 %v395_v15, %v381_v14 }
  0xbb   : > { %v397_v22 = vadd.f32 %v396_v19, %v382_v18  ;;  %v361_v23 = vadd.f32 %v360_v17, %v336_v7 }
  0xbd   : > { %v362_v21 = vadd.f32 %v361_v23, %v708_v30  ;;  %v398_v25 = vadd.f32 %v397_v22, %v383_v20 }
  0xbf   : > { %v399_v27 = vadd.f32 %v398_v25, %v384_v24  ;;  %v363_v28 = vadd.f32 %v362_v21, %v719_v38 }
  0xc1   : > { %v364_v29 = vadd.f32 %v363_v28, %v345_v55  ;;  %v400_v32 = vadd.f32 %v399_v27, %v385_v26 }
  0xc3   : > { %v401_v34 = vadd.f32 %v400_v32, %v386_v31  ;;  %v365_v35 = vadd.f32 %v364_v29, %v348_v8 }
  0xc5   : > { %v366_v36 = vrot.slane %v365_v35, 4  ;;  %v402_v37 = vadd.f32 %v401_v34, %v387_v33 }
  0xc7   : > { %v367_v39 = vadd.f32 %v366_v36, %v365_v35  ;;  %v403_v40 = vrot.slane %v402_v37, 4 }
  0xc9   : > { %v368_v30 = vrot.slane %v367_v39, 2  ;;  %v404_v41 = vadd.f32 %v403_v40, %v402_v37 }
  0xcb   : > { %v369_v42 = vadd.f32 %v368_v30, %v367_v39  ;;  %v405_v43 = vrot.slane %v404_v41, 2 }
  0xcd   : > { %v370_v44 = vrot.slane %v369_v42, 1  ;;  %v406_v45 = vadd.f32 %v405_v43, %v404_v41 }
  0xcf   : > { %v407_v38 = vrot.slane %v406_v45, 1  ;;  %v371_v46 = vadd.f32 %v370_v44, %v369_v42 }
  0xd1   : > { %v408_v47 = vadd.f32 %v407_v38, %v406_v45 }
  0xd3   : > { %v410_v48 = vsel %vm409_vm2, %v371_v46, %v408_v47 }
  0xd4   : > { %v412_v49 = vsel %vm411_vm3, %v410_v48, 0.0 }
  0xd5   : > { %413 = vst [vmem:[%s211_s14] sm:$0xff] %v412_v49 }
  0xd6 PF: > { %s15_s15 = sadd.s32 1, %s596_s15  }
  0xd7   : > { %p12_p5 = scmp.ge.s32.totalorder %s15_s15, 6  }
  0xd9   :  { %14 = sbr.rel (!%p12_p5) target bundleno = 1 (0x1), region = 74 }

// kernel: tile.13
= control target key start
LH: loop header
LB: loop body
LE: loop exit
PB: predicated region body
PF: predicated region fallthrough
CT: control target
= control target key end

     0   :  { %s28_s0 = inlined_call_operand.vmem [shape: f32[8], index: 0, kind: input, shape index: {}]   ;;  %s29_s1 = inlined_call_operand.vmem [shape: f32[9,8], index: 1, kind: output, shape index: {}]  }
   0x1   :  { %v4_v0 = vld [vmem:[%s28_s0] ss:$0 sm:$0xff] }
   0x2   :  { %5 = vst [vmem:[%s29_s1] sm:$0xff] %v4_v0 }
   0x3   :  { %8 = vst [vmem:[%s29_s1 + $0x8] sm:$0xff] %v4_v0 }

// kernel: tile.18
= control target key start
LH: loop header
LB: loop body
LE: loop exit
PB: predicated region body
PF: predicated region fallthrough
CT: control target
= control target key end

     0   :  { %s75_s10 = smov 64   ;;  %s76_s11 = smov 48   ;;  %vm3_vm0 = vcmask 64512   ;;  %vm9_vm1 = vcmask 589312   ;;  %vm15_vm2 = vcmask 523712   ;;  %vm21_vm3 = vcmask 458112   ;;  %s123_s0 = inlined_call_operand.vmem [shape: f32[9,8], index: 0, kind: input, shape index: {}]   ;;  %s124_s1 = inlined_call_operand.vmem [shape: f32[1,72], index: 1, kind: output, shape index: {}]  }
   0x1   :  { %v59_v0 = vld [vmem:[%s123_s0 + $0x8] sm:$0x1]   ;;  %v61_v1 = vld [vmem:[%s123_s0 + $0x6] sm:$0x1]   ;;  %v63_v2 = vld [vmem:[%s123_s0 + $0x4] sm:$0x1]  }
   0x2   :  { %7 = vrot.lane.b32.xlu0 %v59_v0, %s75_s10  ;;  %19 = vrot.lane.b32.xlu1 %v61_v1, %s76_s11  ;;  %s77_s14 = smov 32   ;;  %v60_v3 = vld [vmem:[%s123_s0 + $0x7] sm:$0x1]   ;;  %v62_v4 = vld [vmem:[%s123_s0 + $0x5] sm:$0x1]   ;;  %s78_s19 = smov 56  }
   0x3   :  { %31 = vrot.lane.b32.xlu2 %v63_v2, %s77_s14  ;;  %s79_s20 = smov 40   ;;  %v64_v5 = vld [vmem:[%s123_s0 + $0x3] sm:$0x1]   ;;  %s80_s23 = smov 24   ;;  %v65_v6 = vld [vmem:[%s123_s0 + $0x2] sm:$0x1]  }
   0x4   :  { %v66_v7 = vld [vmem:[%s123_s0 + $0x1] sm:$0x1]   ;;  %s81_s28 = smov 16   ;;  %s82_s29 = smov 8   ;;  %v2_v8 = vld [vmem:[%s123_s0] sm:$0x1]  }
   0x5   :  { %4 = vst.msk [vmem:[#allocation0] sm:$0x1] %vm3_vm0, %v2_v8   ;;  %vm27_vm4 = vcmask 392512   ;;  %vm33_vm5 = vcmask 326912   ;;  %vm39_vm6 = vcmask 261312   ;;  %vm45_vm7 = vcmask 195712  }
   0x6   :  { %vm51_vm8 = vcmask 130112  }
   0xa   :  { %13 = vrot.lane.b32.xlu0 %v60_v3, %s78_s19  ;;  %25 = vrot.lane.b32.xlu1 %v62_v4, %s79_s20 }
   0xb   :  { %37 = vrot.lane.b32.xlu2 %v64_v5, %s80_s23 }
  0x12   :  { %43 = vrot.lane.b32.xlu0 %v65_v6, %s81_s28  ;;  %49 = vrot.lane.b32.xlu1 %v66_v7, %s82_s29 }
  0x5d   :  { %v32_v9 = vpop.permute.xlu2 %31  }
  0x65   :  { %v38_v10 = vpop.permute.xlu2 %37  }
  0x74   :  { %v8_v11 = vpop.permute.xlu0 %7   ;;  %v20_v12 = vpop.permute.xlu1 %19  }
  0x75   :  { %10 = vst.msk [vmem:[#allocation0] sm:$0x1] %vm9_vm1, %v8_v11  }
  0x7c   :  { %v14_v13 = vpop.permute.xlu0 %13   ;;  %v26_v14 = vpop.permute.xlu1 %25  }
  0x7d   :  { %16 = vst.msk [vmem:[#allocation0] sm:$0x1] %vm15_vm2, %v14_v13  }
  0x7e   :  { %22 = vst.msk [vmem:[#allocation0] sm:$0x1] %vm21_vm3, %v20_v12  }
  0x7f   :  { %28 = vst.msk [vmem:[#allocation0] sm:$0x1] %vm27_vm4, %v26_v14  }
  0x80   :  { %34 = vst.msk [vmem:[#allocation0] sm:$0x1] %vm33_vm5, %v32_v9  }
  0x81   :  { %40 = vst.msk [vmem:[#allocation0] sm:$0x1] %vm39_vm6, %v38_v10  }
  0x84   :  { %v44_v15 = vpop.permute.xlu0 %43   ;;  %v50_v16 = vpop.permute.xlu1 %49  }
  0x85   :  { %46 = vst.msk [vmem:[#allocation0] sm:$0x1] %vm45_vm7, %v44_v15  }
  0x86   :  { %52 = vst.msk [vmem:[#allocation0] sm:$0x1] %vm51_vm8, %v50_v16  }
  0x8d   :  { %v55_v17 = vld [vmem:[#allocation0] sm:$0x1] }
  0x8e   :  { %58 = vst [vmem:[%s124_s1] sm:$0x1] %v55_v17 }

// kernel: conv_block_forward.5
= control target key start
LH: loop header
LB: loop body
LE: loop exit
PB: predicated region body
PF: predicated region fallthrough
CT: control target
= control target key end

     0   :  { %s399_s12 = smov 0   ;;  %s497_s0 = inlined_call_operand.vmem [shape: f32[512,128], index: 0, kind: input, shape index: {}]   ;;  %s498_s1 = inlined_call_operand.vmem [shape: f32[1,128], index: 1, kind: input, shape index: {}]   ;;  %s499_s2 = inlined_call_operand.vmem [shape: f32[1,128], index: 2, kind: input, shape index: {}]   ;;  %s500_s3 = inlined_call_operand.vmem [shape: f32[512,128], index: 3, kind: output, shape index: {}]  }
   0x1 LB: > { %s350_s13 = sadd.s32 4294967295, %s377_s12   ;;  %p354_p0 = scmp.ge.s32.totalorder %s377_s12, 1  ;;  %s377_s12 = sphi %s399_s12, %s13_s12  }
   0x2   : > { %p138_p1 = scmp.lt.s32.totalorder %s377_s12, 5 }
   0x4   : > { %p139_p2 = pnand %p354_p0, %p138_p1 }
   0x5   : > { %s355_s14 = sshll.u32 (!%p139_p2), %s350_s13, 4 }
   0x6   : > { %142 = sbr.rel (%p139_p2) target bundleno = 40 (0x28), region = 32  ;;  %p163_p3 = scmp.lt.s32.totalorder (!%p139_p2), %s355_s14, 63 }
   0xb   : > { %s502_s14 = smov (!%p163_p3, %s355_s14), 63  ;;  %v412_v0 = vld [vmem:[%s498_s1] ss:$0 sm:$0xff] }
   0xc   : > { %s356_s17 = sshll.u32 %s502_s14, 3  ;;  %v423_v1 = vld [vmem:[%s499_s2] ss:$0 sm:$0xff] }
   0xd   : > { %s418_s20 = scalar_lea.vmem %s497_s0, %s356_s17  ;;  %s451_s25 = scalar_lea.vmem %s500_s3, %s356_s17 }
   0xe   : > { %v174_v2 = vld [vmem:[%s418_s20] sm:$0xff]  ;;  %v175_v3 = vld [vmem:[%s418_s20 + $0x8] sm:$0xff]  ;;  %v176_v4 = vld [vmem:[%s418_s20 + $0x10] sm:$0xff] }
   0xf   : > { %v194_v5 = vmul.f32 %v412_v0, %v174_v2  ;;  %v195_v6 = vmul.f32 %v412_v0, %v175_v3  ;;  %v196_v7 = vmul.f32 %v412_v0, %v176_v4  ;;  %v177_v8 = vld [vmem:[%s418_s20 + $0x18] sm:$0xff]  ;;  %v178_v9 = vld [vmem:[%s418_s20 + $0x20] sm:$0xff]  ;;  %v179_v10 = vld [vmem:[%s418_s20 + $0x28] sm:$0xff] }
  0x10   : > { %v197_v11 = vmul.f32 %v412_v0, %v177_v8  ;;  %v198_v12 = vmul.f32 %v412_v0, %v178_v9  ;;  %v199_v13 = vmul.f32 %v412_v0, %v179_v10  ;;  %v180_v14 = vld [vmem:[%s418_s20 + $0x30] sm:$0xff]  ;;  %v181_v15 = vld [vmem:[%s418_s20 + $0x38] sm:$0xff]  ;;  %v182_v24 = vld [vmem:[%s418_s20 + $0x40] sm:$0xff] }
  0x11   : > { %v214_v16 = vadd.f32 %v423_v1, %v194_v5  ;;  %v215_v17 = vadd.f32 %v423_v1, %v195_v6  ;;  %v216_v18 = vadd.f32 %v423_v1, %v196_v7  ;;  %v200_v19 = vmul.f32 %v412_v0, %v180_v14  ;;  %v183_v32 = vld [vmem:[%s418_s20 + $0x48] sm:$0xff]  ;;  %v184_v33 = vld [vmem:[%s418_s20 + $0x50] sm:$0xff]  ;;  %v185_v34 = vld [vmem:[%s418_s20 + $0x58] sm:$0xff] }
  0x12   : > { %v217_v20 = vadd.f32 %v423_v1, %v197_v11  ;;  %v218_v21 = vadd.f32 %v423_v1, %v198_v12  ;;  %v219_v22 = vadd.f32 %v423_v1, %v199_v13  ;;  %v201_v23 = vmul.f32 %v412_v0, %v181_v15  ;;  %v186_v46 = vld [vmem:[%s418_s20 + $0x60] sm:$0xff]  ;;  %v187_v56 = vld [vmem:[%s418_s20 + $0x68] sm:$0xff]  ;;  %v188_v57 = vld [vmem:[%s418_s20 + $0x70] sm:$0xff] }
  0x13   : > { %vm230_vm0 = vcmp.gt.f32.partialorder %v214_v16, 0.0  ;;  %v246_v25 = vmul.f32 0.01, %v214_v16  ;;  %vm231_vm1 = vcmp.gt.f32.partialorder %v215_v17, 0.0  ;;  %v247_v26 = vmul.f32 0.01, %v215_v17 }
  0x14   : > { %vm232_vm2 = vcmp.gt.f32.partialorder %v216_v18, 0.0  ;;  %v248_v27 = vmul.f32 0.01, %v216_v18  ;;  %vm233_vm3 = vcmp.gt.f32.partialorder %v217_v20, 0.0  ;;  %v249_v28 = vmul.f32 0.01, %v217_v20 }
  0x15   : > { %v262_v29 = vsel %vm230_vm0, %v214_v16, %v246_v25  ;;  %v263_v30 = vsel %vm231_vm1, %v215_v17, %v247_v26  ;;  %vm234_vm4 = vcmp.gt.f32.partialorder %v218_v21, 0.0  ;;  %v250_v31 = vmul.f32 0.01, %v218_v21  ;;  %v189_v60 = vld [vmem:[%s418_s20 + $0x78] sm:$0xff] }
  0x16   : > { %278 = vst [vmem:[%s451_s25] sm:$0xff] %v262_v29  ;;  %v264_v35 = vsel %vm232_vm2, %v216_v18, %v248_v27  ;;  %v265_v36 = vsel %vm233_vm3, %v217_v20, %v249_v28  ;;  %vm235_vm5 = vcmp.gt.f32.partialorder %v219_v22, 0.0  ;;  %v251_v37 = vmul.f32 0.01, %v219_v22 }
  0x17   : > { %279 = vst [vmem:[%s451_s25 + $0x8] sm:$0xff] %v263_v30  ;;  %v266_v38 = vsel %vm234_vm4, %v218_v21, %v250_v31  ;;  %v220_v39 = vadd.f32 %v423_v1, %v200_v19  ;;  %v221_v40 = vadd.f32 %v423_v1, %v201_v23  ;;  %v202_v41 = vmul.f32 %v412_v0, %v182_v24 }
  0x18   : > { %280 = vst [vmem:[%s451_s25 + $0x10] sm:$0xff] %v264_v35  ;;  %v267_v42 = vsel %vm235_vm5, %v219_v22, %v251_v37  ;;  %v203_v43 = vmul.f32 %v412_v0, %v183_v32  ;;  %v204_v44 = vmul.f32 %v412_v0, %v184_v33  ;;  %v205_v45 = vmul.f32 %v412_v0, %v185_v34 }
  0x19   : > { %281 = vst [vmem:[%s451_s25 + $0x18] sm:$0xff] %v265_v36  ;;  %vm236_vm6 = vcmp.gt.f32.partialorder %v220_v39, 0.0  ;;  %v252_v47 = vmul.f32 0.01, %v220_v39  ;;  %vm237_vm7 = vcmp.gt.f32.partialorder %v221_v40, 0.0  ;;  %v222_v48 = vadd.f32 %v423_v1, %v202_v41 }
  0x1a   : > { %282 = vst [vmem:[%s451_s25 + $0x20] sm:$0xff] %v266_v38  ;;  %v253_v49 = vmul.f32 0.01, %v221_v40  ;;  %v223_v50 = vadd.f32 %v423_v1, %v203_v43  ;;  %v224_v51 = vadd.f32 %v423_v1, %v204_v44  ;;  %v225_v52 = vadd.f32 %v423_v1, %v205_v45 }
  0x1b   : > { %283 = vst [vmem:[%s451_s25 + $0x28] sm:$0xff] %v267_v42  ;;  %v268_v53 = vsel %vm236_vm6, %v220_v39, %v252_v47  ;;  %vm238_vm8 = vcmp.gt.f32.partialorder %v222_v48, 0.0  ;;  %v254_v54 = vmul.f32 0.01, %v222_v48  ;;  %v206_v55 = vmul.f32 %v412_v0, %v186_v46 }
  0x1c   : > { %284 = vst [vmem:[%s451_s25 + $0x30] sm:$0xff] %v268_v53  ;;  %v269_v58 = vsel %vm237_vm7, %v221_v40, %v253_v49  ;;  %vm239_vm9 = vcmp.gt.f32.partialorder %v223_v50, 0.0  ;;  %v255_v59 = vmul.f32 0.01, %v223_v50  ;;  %vm240_vm10 = vcmp.gt.f32.partialorder %v224_v51, 0.0 }
  0x1d   : > { %285 = vst [vmem:[%s451_s25 + $0x38] sm:$0xff] %v269_v58  ;;  %v270_v61 = vsel %vm238_vm8, %v222_v48, %v254_v54  ;;  %v256_v62 = vmul.f32 0.01, %v224_v51  ;;  %vm241_vm11 = vcmp.gt.f32.partialorder %v225_v52, 0.0  ;;  %v257_v63 = vmul.f32 0.01, %v225_v52 }
  0x1e   : > { %286 = vst [vmem:[%s451_s25 + $0x40] sm:$0xff] %v270_v61  ;;  %v271_v2 = vsel %vm239_vm9, %v223_v50, %v255_v59  ;;  %v226_v3 = vadd.f32 %v423_v1, %v206_v55  ;;  %v207_v4 = vmul.f32 %v412_v0, %v187_v56  ;;  %v208_v5 = vmul.f32 %v412_v0, %v188_v57 }
  0x1f   : > { %287 = vst [vmem:[%s451_s25 + $0x48] sm:$0xff] %v271_v2  ;;  %v272_v6 = vsel %vm240_vm10, %v224_v51, %v256_v62  ;;  %v273_v7 = vsel %vm241_vm11, %v225_v52, %v257_v63  ;;  %v209_v8 = vmul.f32 %v412_v0, %v189_v60 }
  0x20   : > { %288 = vst [vmem:[%s451_s25 + $0x50] sm:$0xff] %v272_v6  ;;  %vm242_vm12 = vcmp.gt.f32.partialorder %v226_v3, 0.0  ;;  %v258_v9 = vmul.f32 0.01, %v226_v3  ;;  %v227_v10 = vadd.f32 %v423_v1, %v207_v4  ;;  %v228_v11 = vadd.f32 %v423_v1, %v208_v5 }
  0x21   : > { %289 = vst [vmem:[%s451_s25 + $0x58] sm:$0xff] %v273_v7  ;;  %v229_v12 = vadd.f32 %v423_v1, %v209_v8 }
  0x22   : > { %v274_v13 = vsel %vm242_vm12, %v226_v3, %v258_v9  ;;  %vm243_vm13 = vcmp.gt.f32.partialorder %v227_v10, 0.0  ;;  %v259_v14 = vmul.f32 0.01, %v227_v10  ;;  %vm244_vm14 = vcmp.gt.f32.partialorder %v228_v11, 0.0 }
  0x23   : > { %290 = vst [vmem:[%s451_s25 + $0x60] sm:$0xff] %v274_v13  ;;  %v260_v15 = vmul.f32 0.01, %v228_v11  ;;  %vm245_vm15 = vcmp.gt.f32.partialorder %v229_v12, 0.0  ;;  %v261_v0 = vmul.f32 0.01, %v229_v12 }
  0x24   : > { %v275_v16 = vsel %vm243_vm13, %v227_v10, %v259_v14 }
  0x25   : > { %291 = vst [vmem:[%s451_s25 + $0x68] sm:$0xff] %v275_v16  ;;  %v276_v17 = vsel %vm244_vm14, %v228_v11, %v260_v15  ;;  %v277_v18 = vsel %vm245_vm15, %v229_v12, %v261_v0 }
  0x26   : > { %292 = vst [vmem:[%s451_s25 + $0x70] sm:$0xff] %v276_v17 }
  0x27   : > { %293 = vst [vmem:[%s451_s25 + $0x78] sm:$0xff] %v277_v18 }
  0x28 PF: > { %s13_s12 = sadd.s32 1, %s377_s12  }
  0x29   : > { %p10_p4 = scmp.ge.s32.totalorder %s13_s12, 6  }
  0x2b   :  { %12 = sbr.rel (!%p10_p4) target bundleno = 1 (0x1), region = 62 }

// kernel: conv_block_forward.4
= control target key start
LH: loop header
LB: loop body
LE: loop exit
PB: predicated region body
PF: predicated region fallthrough
CT: control target
= control target key end

     0   :  { %s788_s21 = smov 0   ;;  %s970_s0 = inlined_call_operand.vmem [shape: f32[512,72], index: 0, kind: input, shape index: {}]   ;;  %s971_s1 = inlined_call_operand.vmem [shape: f32[1,72], index: 1, kind: input, shape index: {}]   ;;  %s972_s2 = inlined_call_operand.vmem [shape: f32[1,72], index: 2, kind: input, shape index: {}]   ;;  %s973_s3 = inlined_call_operand.vmem [shape: f32[72,128], index: 3, kind: input, shape index: {}]   ;;  %s974_s4 = inlined_call_operand.vmem [shape: f32[1,128], index: 4, kind: input, shape index: {}]   ;;  %s975_s5 = inlined_call_operand.vmem [shape: f32[512,128], index: 5, kind: output, shape index: {0}]   ;;  %s976_s6 = inlined_call_operand.vmem [shape: f32[32,128], index: 6, kind: output, shape index: {1}]  }
   0x1 LB: > { %s794_s22 = sadd.s32 4294967295, %s751_s21   ;;  %p683_p0 = scmp.ge.s32.totalorder %s751_s21, 1  ;;  %s751_s21 = sphi %s788_s21, %s17_s21  }
   0x2   : > { %p216_p1 = scmp.lt.s32.totalorder %s751_s21, 5 }
   0x4   : > { %p217_p2 = pnand %p683_p0, %p216_p1 }
   0x5   : > { %s684_s27 = sshll.u32 (!%p217_p2), %s794_s22, 4  ;;  %p262_p4 = scmp.lt.s32.totalorder (!%p217_p2), %s794_s22, 3 }
   0x6   : > { %220 = sbr.rel (%p217_p2) target bundleno = 222 (0xde), region = 40  ;;  %p251_p3 = scmp.lt.s32.totalorder (!%p217_p2), %s684_s27, 63 }
   0xb   : > { %v378_v0 = vld [vmem:[%s973_s3 + $0x40] sm:$0xff]  ;;  %v377_v1 = vld [vmem:[%s973_s3 + $0x38] sm:$0xff]  ;;  %v376_v2 = vld [vmem:[%s973_s3 + $0x30] sm:$0xff]  ;;  %s978_s27 = smov (!%p251_p3, %s684_s27), 63  ;;  %vm379_vm3 = vcmask 588800   ;;  %s980_s22 = smov (!%p262_p4, %s794_s22), 3 }
   0xc   : > { %435 = vmatpush.msra.mxu0 %v378_v0  ;;  %707 = vmatpush.msra.mxu1 %v378_v0  ;;  %v375_v3 = vld [vmem:[%s973_s3 + $0x28] sm:$0xff]  ;;  %v816_v4 = vld [vmem:[%s971_s1] ss:$0 sm:$0xff]  ;;  %s685_s10 = sshll.u32 %s978_s27, 3  ;;  %v373_v10 = vld [vmem:[%s973_s3 + $0x18] sm:$0xff]  ;;  %s688_s27 = sshll.u32 %s980_s22, 3 }
   0xd   : > { %708 = vmatpush.msra.mxu2 %v378_v0  ;;  %709 = vmatpush.msra.mxu3 %v378_v0  ;;  %v374_v5 = vld [vmem:[%s973_s3 + $0x20] sm:$0xff]  ;;  %s827_s15 = scalar_lea.vmem %s970_s0, %s685_s10  ;;  %v372_v16 = vld [vmem:[%s973_s3 + $0x10] sm:$0xff]  ;;  %v371_v22 = vld [vmem:[%s973_s3 + $0x8] sm:$0xff]  ;;  %s922_s9 = scalar_lea.vmem %s975_s5, %s685_s10 }
   0xe   : > { %436 = vmatpush.msra.mxu0 %v377_v1  ;;  %710 = vmatpush.msra.mxu1 %v377_v1  ;;  %v832_v6 = vld [vmem:[%s972_s2] ss:$0 sm:$0xff]  ;;  %v267_v8 = vld [vmem:[%s827_s15 + $0x8] sm:$0xff]  ;;  %v268_v32 = vld [vmem:[%s827_s15 + $0x10] sm:$0xff]  ;;  %s265_s12 = scalar_lea.vmem %s976_s6, %s688_s27 }
   0xf   : > { %711 = vmatpush.msra.mxu2 %v377_v1  ;;  %712 = vmatpush.msra.mxu3 %v377_v1  ;;  %v266_v7 = vld [vmem:[%s827_s15] sm:$0xff]  ;;  %v271_v14 = vld [vmem:[%s827_s15 + $0x28] sm:$0xff]  ;;  %v287_v18 = vmul.f32 %v816_v4, %v267_v8  ;;  %v272_v36 = vld [vmem:[%s827_s15 + $0x30] sm:$0xff]  ;;  %v288_v39 = vmul.f32 %v816_v4, %v268_v32 }
  0x10   : > { %437 = vmatpush.msra.mxu0 %v376_v2  ;;  %713 = vmatpush.msra.mxu1 %v376_v2  ;;  %v270_v9 = vld [vmem:[%s827_s15 + $0x20] sm:$0xff]  ;;  %v286_v11 = vmul.f32 %v816_v4, %v266_v7  ;;  %v291_v21 = vmul.f32 %v816_v4, %v271_v14  ;;  %v275_v24 = vld [vmem:[%s827_s15 + $0x48] sm:$0xff]  ;;  %v276_v42 = vld [vmem:[%s827_s15 + $0x50] sm:$0xff]  ;;  %v292_v45 = vmul.f32 %v816_v4, %v272_v36 }
  0x11   : > { %714 = vmatpush.msra.mxu2 %v376_v2  ;;  %715 = vmatpush.msra.mxu3 %v376_v2  ;;  %v290_v12 = vmul.f32 %v816_v4, %v270_v9  ;;  %v274_v13 = vld [vmem:[%s827_s15 + $0x40] sm:$0xff]  ;;  %v307_v29 = vadd.f32 %v832_v6, %v287_v18  ;;  %v295_v34 = vmul.f32 %v816_v4, %v275_v24  ;;  %v279_v37 = vld [vmem:[%s827_s15 + $0x68] sm:$0xff]  ;;  %v280_v52 = vld [vmem:[%s827_s15 + $0x70] sm:$0xff] }
  0x12   : > { %438 = vmatpush.msra.mxu0 %v375_v3  ;;  %716 = vmatpush.msra.mxu1 %v375_v3  ;;  %v294_v15 = vmul.f32 %v816_v4, %v274_v13  ;;  %v306_v17 = vadd.f32 %v832_v6, %v286_v11  ;;  %v278_v27 = vld [vmem:[%s827_s15 + $0x60] sm:$0xff]  ;;  %v311_v33 = vadd.f32 %v832_v6, %v291_v21  ;;  %v269_v57 = vld [vmem:[%s827_s15 + $0x18] sm:$0xff] }
  0x13   : > { %717 = vmatpush.msra.mxu2 %v375_v3  ;;  %718 = vmatpush.msra.mxu3 %v375_v3  ;;  %v310_v19 = vadd.f32 %v832_v6, %v290_v12  ;;  %v370_v28 = vld [vmem:[%s973_s3] sm:$0xff]  ;;  %v298_v35 = vmul.f32 %v816_v4, %v278_v27  ;;  %v315_v40 = vadd.f32 %v832_v6, %v295_v34  ;;  %v339_v43 = vmul.f32 0.01, %v307_v29  ;;  %v273_v59 = vld [vmem:[%s827_s15 + $0x38] sm:$0xff] }
  0x14   : > { %439 = vmatpush.msra.mxu0 %v374_v5  ;;  %719 = vmatpush.msra.mxu1 %v374_v5  ;;  %v314_v20 = vadd.f32 %v832_v6, %v294_v15  ;;  %vm322_vm0 = vcmp.gt.f32.partialorder %v306_v17, 0.0  ;;  %v338_v23 = vmul.f32 0.01, %v306_v17  ;;  %v343_v44 = vmul.f32 0.01, %v311_v33  ;;  %v277_v63 = vld [vmem:[%s827_s15 + $0x58] sm:$0xff] }
  0x15   : > { %720 = vmatpush.msra.mxu2 %v374_v5  ;;  %721 = vmatpush.msra.mxu3 %v374_v5  ;;  %vm326_vm1 = vcmp.gt.f32.partialorder %v310_v19, 0.0  ;;  %v342_v25 = vmul.f32 0.01, %v310_v19  ;;  %v318_v41 = vadd.f32 %v832_v6, %v298_v35  ;;  %v299_v46 = vmul.f32 %v816_v4, %v279_v37 }
  0x16   : > { %440 = vmatpush.msra.mxu0 %v373_v10  ;;  %722 = vmatpush.msra.mxu1 %v373_v10  ;;  %v346_v26 = vmul.f32 0.01, %v314_v20  ;;  %vm330_vm2 = vcmp.gt.f32.partialorder %v314_v20, 0.0  ;;  %v354_v30 = vsel %vm322_vm0, %v306_v17, %v338_v23  ;;  %vm323_vm4 = vcmp.gt.f32.partialorder %v307_v29, 0.0 }
  0x17   : > { %723 = vmatpush.msra.mxu2 %v373_v10  ;;  %724 = vmatpush.msra.mxu3 %v373_v10  ;;  %v358_v31 = vsel %vm326_vm1, %v310_v19, %v342_v25  ;;  %vm327_vm5 = vcmp.gt.f32.partialorder %v311_v33, 0.0  ;;  %vm334_vm6 = vcmp.gt.f32.partialorder %v318_v41, 0.0  ;;  %v350_v47 = vmul.f32 0.01, %v318_v41  ;;  %v281_v10 = vld [vmem:[%s827_s15 + $0x78] sm:$0xff] }
  0x18   : > { %441 = vmatpush.msra.mxu0 %v372_v16  ;;  %725 = vmatpush.msra.mxu1 %v372_v16  ;;  %v362_v38 = vsel %vm330_vm2, %v314_v20, %v346_v26  ;;  %v347_v48 = vmul.f32 0.01, %v315_v40  ;;  %v296_v49 = vmul.f32 %v816_v4, %v276_v42  ;;  %vm331_vm7 = vcmp.gt.f32.partialorder %v315_v40, 0.0 }
  0x19   : > { %726 = vmatpush.msra.mxu2 %v372_v16  ;;  %727 = vmatpush.msra.mxu3 %v372_v16  ;;  %v366_v50 = vsel %vm334_vm6, %v318_v41, %v350_v47  ;;  %v319_v51 = vadd.f32 %v832_v6, %v299_v46  ;;  %v355_v53 = vsel %vm323_vm4, %v307_v29, %v339_v43  ;;  %vm551_vm1 = vcmask 1040384  }
  0x1a   : > { %442 = vmatpush.msra.mxu0 %v371_v22  ;;  %728 = vmatpush.msra.mxu1 %v371_v22  ;;  %v308_v54 = vadd.f32 %v832_v6, %v288_v39  ;;  %v359_v55 = vsel %vm327_vm5, %v311_v33, %v343_v44  ;;  %v312_v56 = vadd.f32 %v832_v6, %v292_v45  ;;  %vm553_vm2 = vcmask 1041408  }
  0x1b   : > { %729 = vmatpush.msra.mxu2 %v371_v22  ;;  %730 = vmatpush.msra.mxu3 %v371_v22  ;;  %v351_v58 = vmul.f32 0.01, %v319_v51  ;;  %v363_v60 = vsel %vm331_vm7, %v315_v40, %v347_v48  ;;  %v316_v61 = vadd.f32 %v832_v6, %v296_v49  ;;  %vm335_vm8 = vcmp.gt.f32.partialorder %v319_v51, 0.0 }
  0x1c   : > { %443 = vmatpush.msra.mxu0 %v370_v28  ;;  %731 = vmatpush.msra.mxu1 %v370_v28  ;;  %v300_v62 = vmul.f32 %v816_v4, %v280_v52  ;;  %v340_v0 = vmul.f32 0.01, %v308_v54  ;;  %v289_v1 = vmul.f32 %v816_v4, %v269_v57  ;;  %v344_v2 = vmul.f32 0.01, %v312_v56 }
  0x1d   : > { %689 = vmatmul.msk.f32.vlgmr.msra.gmra.mxu0 %vm379_vm3, %v354_v30  ;;  %693 = vmatmul.msk.f32.vlgmr.msra.gmra.mxu1 %vm379_vm3, %v358_v31  ;;  %v293_v3 = vmul.f32 %v816_v4, %v273_v59  ;;  %vm324_vm9 = vcmp.gt.f32.partialorder %v308_v54, 0.0  ;;  %vm328_vm10 = vcmp.gt.f32.partialorder %v312_v56, 0.0  ;;  %v367_v5 = vsel %vm335_vm8, %v319_v51, %v351_v58 }
  0x1e   : > { %732 = vmatpush.msra.mxu2 %v370_v28  ;;  %733 = vmatpush.msra.mxu3 %v370_v28  ;;  %v320_v7 = vadd.f32 %v832_v6, %v300_v62  ;;  %v348_v8 = vmul.f32 0.01, %v316_v61  ;;  %v297_v9 = vmul.f32 %v816_v4, %v277_v63  ;;  %vm332_vm11 = vcmp.gt.f32.partialorder %v316_v61, 0.0 }
  0x1f   : > { %697 = vmatmul.msk.f32.vlgmr.msra.gmra.mxu2 %vm379_vm3, %v362_v38  ;;  %701 = vmatmul.msk.f32.vlgmr.msra.gmra.mxu3 %vm379_vm3, %v366_v50  ;;  %v356_v11 = vsel %vm324_vm9, %v308_v54, %v340_v0  ;;  %v309_v12 = vadd.f32 %v832_v6, %v289_v1  ;;  %v360_v13 = vsel %vm328_vm10, %v312_v56, %v344_v2 }
  0x20   : > { %v313_v14 = vadd.f32 %v832_v6, %v293_v3  ;;  %v352_v15 = vmul.f32 0.01, %v320_v7  ;;  %v301_v16 = vmul.f32 %v816_v4, %v281_v10  ;;  %v364_v17 = vsel %vm332_vm11, %v316_v61, %v348_v8 }
  0x21   : > { %v317_v18 = vadd.f32 %v832_v6, %v297_v9  ;;  %vm336_vm12 = vcmp.gt.f32.partialorder %v320_v7, 0.0  ;;  %v341_v19 = vmul.f32 0.01, %v309_v12  ;;  %vm325_vm13 = vcmp.gt.f32.partialorder %v309_v12, 0.0 }
  0x22   : > { %v345_v20 = vmul.f32 0.01, %v313_v14  ;;  %vm329_vm14 = vcmp.gt.f32.partialorder %v313_v14, 0.0  ;;  %v368_v21 = vsel %vm336_vm12, %v320_v7, %v352_v15  ;;  %v321_v22 = vadd.f32 %v832_v6, %v301_v16  ;;  %v915_v6 = vld [vmem:[%s974_s4] ss:$0 sm:$0xff] }
  0x23   : > { %v349_v23 = vmul.f32 0.01, %v317_v18  ;;  %vm333_vm15 = vcmp.gt.f32.partialorder %v317_v18, 0.0  ;;  %v357_v4 = vsel %vm325_vm13, %v309_v12, %v341_v19 }
  0x24   : > { %v361_v24 = vsel %vm329_vm14, %v313_v14, %v345_v20  ;;  %v353_v25 = vmul.f32 0.01, %v321_v22  ;;  %vm337_vm0 = vcmp.gt.f32.partialorder %v321_v22, 0.0 }
  0x25   : > { %690 = vmatmul.msk.f32.gmra.mxu0 %vm379_vm3, %v355_v53  ;;  %694 = vmatmul.msk.f32.gmra.mxu1 %vm379_vm3, %v359_v55  ;;  %v365_v26 = vsel %vm333_vm15, %v317_v18, %v349_v23 }
  0x26   : > { %v369_v27 = vsel %vm337_vm0, %v321_v22, %v353_v25 }
  0x27   : > { %698 = vmatmul.msk.f32.gmra.mxu2 %vm379_vm3, %v363_v60  ;;  %702 = vmatmul.msk.f32.gmra.mxu3 %vm379_vm3, %v367_v5 }
  0x2d   : > { %691 = vmatmul.msk.f32.gmra.mxu0 %vm379_vm3, %v356_v11  ;;  %695 = vmatmul.msk.f32.gmra.mxu1 %vm379_vm3, %v360_v13 }
  0x2f   : > { %699 = vmatmul.msk.f32.gmra.mxu2 %vm379_vm3, %v364_v17  ;;  %703 = vmatmul.msk.f32.gmra.mxu3 %vm379_vm3, %v368_v21 }
  0x35   : > { %692 = vmatmul.msk.f32.gmra.mxu0 %vm379_vm3, %v357_v4  ;;  %696 = vmatmul.msk.f32.gmra.mxu1 %vm379_vm3, %v361_v24 }
  0x37   : > { %700 = vmatmul.msk.f32.gmra.mxu2 %vm379_vm3, %v365_v26  ;;  %704 = vmatmul.msk.f32.gmra.mxu3 %vm379_vm3, %v369_v27 }
  0x9a   : > { %v445_v28 = vpop.f32.mrf.mxu0  ;;  %v457_v29 = vpop.f32.mrf.mxu1 }
  0x9b   : > { %v560_v30 = vadd.f32 %v915_v6, %v445_v28  ;;  %v564_v31 = vadd.f32 %v915_v6, %v457_v29  ;;  %v514_v49 = vmul.f32 %v445_v28, %v445_v28  ;;  %v518_v63 = vmul.f32 %v457_v29, %v457_v29 }
  0x9d   : > { %576 = vst [vmem:[%s922_s9] sm:$0xff] %v560_v30 }
  0x9e   : > { %580 = vst [vmem:[%s922_s9 + $0x20] sm:$0xff] %v564_v31 }
  0xa2   : > { %v448_v32 = vpop.f32.mrf.mxu0  ;;  %v460_v33 = vpop.f32.mrf.mxu1 }
  0xa3   : > { %v561_v34 = vadd.f32 %v915_v6, %v448_v32  ;;  %v469_v35 = vpop.f32.mrf.mxu2  ;;  %v565_v36 = vadd.f32 %v915_v6, %v460_v33  ;;  %v932_v38 = vpop.f32.mrf.mxu3  ;;  %v515_v46 = vmul.f32 %v448_v32, %v448_v32  ;;  %v493_v50 = vadd.f32 %v448_v32, %v445_v28 }
  0xa4   : > { %v568_v37 = vadd.f32 %v915_v6, %v469_v35  ;;  %v572_v39 = vadd.f32 %v915_v6, %v932_v38  ;;  %v519_v5 = vmul.f32 %v460_v33, %v460_v33  ;;  %v522_v17 = vmul.f32 %v469_v35, %v469_v35 }
  0xa5   : > { %577 = vst [vmem:[%s922_s9 + $0x8] sm:$0xff] %v561_v34  ;;  %v530_v52 = vadd.f32 %v515_v46, %v514_v49  ;;  %v526_v30 = vmul.f32 %v932_v38, %v932_v38 }
  0xa6   : > { %581 = vst [vmem:[%s922_s9 + $0x28] sm:$0xff] %v565_v36 }
  0xa7   : > { %584 = vst [vmem:[%s922_s9 + $0x40] sm:$0xff] %v568_v37 }
  0xa8   : > { %588 = vst [vmem:[%s922_s9 + $0x60] sm:$0xff] %v572_v39 }
  0xaa   : > { %v451_v40 = vpop.f32.mrf.mxu0  ;;  %v463_v41 = vpop.f32.mrf.mxu1 }
  0xab   : > { %v562_v42 = vadd.f32 %v915_v6, %v451_v40  ;;  %v472_v43 = vpop.f32.mrf.mxu2  ;;  %v566_v44 = vadd.f32 %v915_v6, %v463_v41  ;;  %v484_v47 = vpop.f32.mrf.mxu3  ;;  %v516_v51 = vmul.f32 %v451_v40, %v451_v40  ;;  %v494_v53 = vadd.f32 %v493_v50, %v451_v40 }
  0xac   : > { %v569_v45 = vadd.f32 %v915_v6, %v472_v43  ;;  %v573_v48 = vadd.f32 %v915_v6, %v484_v47  ;;  %v520_v10 = vmul.f32 %v463_v41, %v463_v41  ;;  %v523_v22 = vmul.f32 %v472_v43, %v472_v43 }
  0xad   : > { %578 = vst [vmem:[%s922_s9 + $0x10] sm:$0xff] %v562_v42  ;;  %v531_v56 = vadd.f32 %v530_v52, %v516_v51 }
  0xae   : > { %582 = vst [vmem:[%s922_s9 + $0x30] sm:$0xff] %v566_v44 }
  0xaf   : > { %585 = vst [vmem:[%s922_s9 + $0x48] sm:$0xff] %v569_v45 }
  0xb0   : > { %589 = vst [vmem:[%s922_s9 + $0x68] sm:$0xff] %v573_v48 }
  0xb2   : > { %v454_v54 = vpop.f32.mrf.mxu0  ;;  %v466_v55 = vpop.f32.mrf.mxu1 }
  0xb3   : > { %v495_v57 = vadd.f32 %v494_v53, %v454_v54  ;;  %v517_v58 = vmul.f32 %v454_v54, %v454_v54  ;;  %v563_v59 = vadd.f32 %v915_v6, %v454_v54  ;;  %v475_v60 = vpop.f32.mrf.mxu2  ;;  %v567_v61 = vadd.f32 %v915_v6, %v466_v55  ;;  %v487_v2 = vpop.f32.mrf.mxu3 }
  0xb4   : > { %v570_v62 = vadd.f32 %v915_v6, %v475_v60  ;;  %v574_v3 = vadd.f32 %v915_v6, %v487_v2  ;;  %v521_v12 = vmul.f32 %v466_v55, %v466_v55  ;;  %v524_v25 = vmul.f32 %v475_v60, %v475_v60 }
  0xb5   : > { %v496_v0 = vadd.f32 %v495_v57, %v457_v29  ;;  %v532_v1 = vadd.f32 %v531_v56, %v517_v58  ;;  %579 = vst [vmem:[%s922_s9 + $0x18] sm:$0xff] %v563_v59  ;;  %v528_v36 = vmul.f32 %v487_v2, %v487_v2 }
  0xb6   : > { %583 = vst [vmem:[%s922_s9 + $0x38] sm:$0xff] %v567_v61 }
  0xb7   : > { %v533_v7 = vadd.f32 %v532_v1, %v518_v63  ;;  %v497_v8 = vadd.f32 %v496_v0, %v460_v33  ;;  %586 = vst [vmem:[%s922_s9 + $0x50] sm:$0xff] %v570_v62  ;;  %v527_v33 = vmul.f32 %v484_v47, %v484_v47 }
  0xb8   : > { %590 = vst [vmem:[%s922_s9 + $0x70] sm:$0xff] %v574_v3 }
  0xb9   : > { %v498_v9 = vadd.f32 %v497_v8, %v463_v41  ;;  %v534_v11 = vadd.f32 %v533_v7, %v519_v5 }
  0xbb   : > { %v535_v13 = vadd.f32 %v534_v11, %v520_v10  ;;  %v499_v14 = vadd.f32 %v498_v9, %v466_v55  ;;  %v478_v15 = vpop.f32.mrf.mxu2  ;;  %v490_v20 = vpop.f32.mrf.mxu3 }
  0xbc   : > { %v571_v16 = vadd.f32 %v915_v6, %v478_v15  ;;  %v575_v21 = vadd.f32 %v915_v6, %v490_v20  ;;  %v525_v27 = vmul.f32 %v478_v15, %v478_v15  ;;  %v529_v39 = vmul.f32 %v490_v20, %v490_v20 }
  0xbd   : > { %v500_v18 = vadd.f32 %v499_v14, %v469_v35  ;;  %v536_v19 = vadd.f32 %v535_v13, %v521_v12 }
  0xbe   : > { %587 = vst [vmem:[%s922_s9 + $0x58] sm:$0xff] %v571_v16 }
  0xbf   : > { %v537_v23 = vadd.f32 %v536_v19, %v522_v17  ;;  %v501_v4 = vadd.f32 %v500_v18, %v472_v43  ;;  %591 = vst [vmem:[%s922_s9 + $0x78] sm:$0xff] %v575_v21 }
  0xc1   : > { %v502_v24 = vadd.f32 %v501_v4, %v475_v60  ;;  %v538_v26 = vadd.f32 %v537_v23, %v523_v22 }
  0xc3   : > { %v539_v28 = vadd.f32 %v538_v26, %v524_v25  ;;  %v503_v29 = vadd.f32 %v502_v24, %v478_v15 }
  0xc5   : > { %v504_v31 = vadd.f32 %v503_v29, %v932_v38  ;;  %v540_v32 = vadd.f32 %v539_v28, %v525_v27 }
  0xc7   : > { %v541_v6 = vadd.f32 %v540_v32, %v526_v30  ;;  %v505_v34 = vadd.f32 %v504_v31, %v484_v47 }
  0xc9   : > { %v506_v35 = vadd.f32 %v505_v34, %v487_v2  ;;  %v542_v37 = vadd.f32 %v541_v6, %v527_v33 }
  0xcb   : > { %v543_v40 = vadd.f32 %v542_v37, %v528_v36  ;;  %v507_v41 = vadd.f32 %v506_v35, %v490_v20 }
  0xcd   : > { %v508_v42 = vrot.slane %v507_v41, 4  ;;  %v544_v43 = vadd.f32 %v543_v40, %v529_v39 }
  0xcf   : > { %v509_v44 = vadd.f32 %v508_v42, %v507_v41  ;;  %v545_v45 = vrot.slane %v544_v43, 4 }
  0xd1   : > { %v510_v46 = vrot.slane %v509_v44, 2  ;;  %v546_v48 = vadd.f32 %v545_v45, %v544_v43 }
  0xd3   : > { %v511_v38 = vadd.f32 %v510_v46, %v509_v44  ;;  %v547_v49 = vrot.slane %v546_v48, 2 }
  0xd5   : > { %v512_v50 = vrot.slane %v511_v38, 1  ;;  %v548_v51 = vadd.f32 %v547_v49, %v546_v48 }
  0xd7   : > { %v549_v47 = vrot.slane %v548_v51, 1  ;;  %v513_v52 = vadd.f32 %v512_v50, %v511_v38 }
  0xd9   : > { %v550_v53 = vadd.f32 %v549_v47, %v548_v51 }
  0xdb   : > { %v552_v54 = vsel %vm551_vm1, %v513_v52, %v550_v53 }
  0xdc   : > { %v554_v55 = vsel %vm553_vm2, %v552_v54, 0.0 }
  0xdd   : > { %555 = vst [vmem:[%s265_s12] sm:$0xff] %v554_v55 }
  0xde PF: > { %s17_s21 = sadd.s32 1, %s751_s21  }
  0xdf   : > { %p14_p5 = scmp.ge.s32.totalorder %s17_s21, 6  }
  0xe1   :  { %16 = sbr.rel (!%p14_p5) target bundleno = 1 (0x1), region = 82 }

</bundles_post_ra>
